<compile_context>
chip_gen: v6e
topology: v6e:2x2x1
jax: 0.10.0
libtpu: 0.0.40
codegen_flags: <defaults>
</compile_context>

<pallas_src>
import math

import jax
import jax.numpy as jnp
import numpy as np
from jax.experimental import pallas as pl
from jax.experimental.pallas import tpu as pltpu

# ----------------------------- module constants -----------------------------
S   = 64.0
M   = 0.5
EPS = 1e-4

# Scalar trig constants, precomputed in Python (never in-kernel).
COS_M   = math.cos(M)
SIN_M   = math.sin(M)
# theta + m clips at (pi - eps)  <=>  cosine < cos(pi - eps - m)
THRESH  = math.cos(math.pi - EPS - M)
CLIPVAL = math.cos(math.pi - EPS)
# NOTE: the lower clip (theta_m >= eps) can never trigger once cosine has been
# clamped to <= 1 - eps (acos(1 - 1e-4) ~= 0.0141 > eps), so it is omitted.

# ------------------------------- tiling -------------------------------------
TM_MAX = 128     # batch-tile cap
TN_MAX = 4096    # class-tile cap; ~13-14 grid steps at classnum=51332.
# Explicit scoped-VMEM budget: covers the ~12-13 MiB double-buffered working
# set at E=512 / TM=128 / TN=4096 on every generation (v5e default is 16 MiB).
VMEM_LIMIT_BYTES = 32 * 1024 * 1024


def _round_up(x, m):
    return (x + m - 1) // m * m


def _choose_class_tile(c128, class_tile):
    """Pick the class-tile width (multiple of 128).  Deterministic in
    (classnum, class_tile) so prepare_* and arcface_forward always agree."""
    tn = TN_MAX if class_tile is None else class_tile
    tn = max(128, min(_round_up(tn, 128), c128))
    n_ct = -(-c128 // tn)
    if class_tile is None and n_ct > 2 and n_ct % 2 == 1:
        # Prefer an even number of class tiles so v7x's two TensorCores get a
        # balanced split of the (parallel) class axis.
        tn_alt = max(128, min(_round_up(-(-c128 // (n_ct + 1)), 128), c128))
        if (-(-c128 // tn_alt)) % 2 == 0:
            tn = tn_alt
    return tn


# ------------------------------ kernel --------------------------------------
def _arcface_kernel(bitmap_ref, emb_ref, w_ref, scale_ref, lab_ref, out_ref):
    """One (TM, TN) logits tile per grid step; full embedding dim per block."""
    j = pl.program_id(0)                    # class-tile index (outer, parallel)
    i = pl.program_id(1)                    # batch-tile index (inner)
    tn = out_ref.shape[1]

    w = w_ref[...]
    if w.dtype != emb_ref.dtype:            # int8-streamed weights -> bf16
        w = w.astype(emb_ref.dtype)
    prec = jax.lax.Precision.HIGHEST if emb_ref.dtype == jnp.float32 else None
    logits = jnp.dot(emb_ref[...], w,
                     preferred_element_type=jnp.float32, precision=prec)

    # cosine = emb @ (W / ||W||_col); the per-column 1/norm (with the int8
    # dequant scale folded in) is the precomputed (1, TN) side input.
    cosine = jnp.clip(logits * scale_ref[...], -1.0 + EPS, 1.0 - EPS)

    # Margin-free result first (covers the tiles holding no label column).
    out_ref[...] = (cosine * S).astype(out_ref.dtype)

    # Margin epilogue only on tiles that actually contain a label column.
    @pl.when(bitmap_ref[j * pl.num_programs(1) + i] != 0)
    def _():
        # cos(theta+m) = cos(th) cos(m) - sin(th) sin(m); sin(th) >= 0 on [0,pi]
        sin_theta = jnp.sqrt(jnp.maximum(1.0 - cosine * cosine, 0.0))
        cos_theta_m = cosine * COS_M - sin_theta * SIN_M
        cos_theta_m = jnp.where(cosine < THRESH, CLIPVAL, cos_theta_m)
        cols = j * tn + jax.lax.broadcasted_iota(jnp.int32, (1, tn), 1)
        is_label = lab_ref[...] == cols                     # (TM,1) == (1,TN)
        out_ref[...] = (jnp.where(is_label, cos_theta_m, cosine) * S
                        ).astype(out_ref.dtype)


# ------------------------ one-time weight preparation ------------------------
def prepare_arcface_weight(weight, weight_dtype=jnp.bfloat16, class_tile=None):
    """Cast + pad the weight and precompute the (1, C_pad) per-column scale.

    Run once at parameter-update time (jit it separately if desired) so the
    forward path never makes an extra full pass over the (E, C) weight.
    Returns (w_q, col_scale)."""
    _, C = weight.shape
    c128 = _round_up(C, 128)
    tn = _choose_class_tile(c128, class_tile)
    c_pad = _round_up(c128, tn)

    w32 = weight.astype(jnp.float32)
    inv_norm = jax.lax.rsqrt(jnp.sum(w32 * w32, axis=0, keepdims=True))  # (1,C)

    if weight_dtype == jnp.int8:
        # Per-column symmetric int8; fold the dequant scale into the column
        # scale (ArcFace divides by the column norm anyway).
        maxabs = jnp.max(jnp.abs(w32), axis=0, keepdims=True)
        scale = jnp.where(maxabs > 0, maxabs / 127.0, 1.0)
        w_q = jnp.round(w32 / scale).astype(jnp.int8)
        col_scale = (inv_norm * scale).astype(jnp.float32)
    else:
        w_q = weight.astype(weight_dtype)
        col_scale = inv_norm.astype(jnp.float32)

    if c_pad != C:
        w_q = jnp.pad(w_q, ((0, 0), (0, c_pad - C)))
        # padded columns get scale 1 so rsqrt(0) never produces inf/NaN
        col_scale = jnp.pad(col_scale, ((0, 0), (0, c_pad - C)),
                            constant_values=1.0)
    return w_q, col_scale


# --------------------------------- forward -----------------------------------
def arcface_forward(embeddings, norms, label, w_q, col_scale, classnum, *,
                    class_tile=None, batch_tile=None, out_dtype=jnp.float32):
    """ArcFace forward.  `norms` is accepted (like the PyTorch module) but
    unused.  `w_q` / `col_scale` come from prepare_arcface_weight with the
    same (classnum, class_tile)."""
    del norms  # unused in the reference forward as well
    B, E = embeddings.shape
    E2, c_pad = w_q.shape
    assert E == E2

    c128 = _round_up(classnum, 128)
    tn = _choose_class_tile(c128, class_tile)
    assert c_pad == _round_up(c128, tn), (
        "weight was prepared with a different class_tile / classnum")

    emb_dtype = jnp.float32 if w_q.dtype == jnp.float32 else jnp.bfloat16
    sub = 8 if emb_dtype == jnp.float32 else 16   # bf16 packs (16,128) sublanes
    tm = batch_tile if batch_tile is not None else min(TM_MAX, _round_up(B, sub))
    tm = _round_up(tm, sub)
    b_pad = _round_up(B, tm)

    n_ct = c_pad // tn
    n_bt = b_pad // tm

    emb_q = embeddings.astype(emb_dtype)
    lab2d = label.reshape(B, 1).astype(jnp.int32)
    if b_pad != B:
        emb_q = jnp.pad(emb_q, ((0, b_pad - B), (0, 0)))
        lab2d = jnp.pad(lab2d, ((0, b_pad - B), (0, 0)), constant_values=-1)

    # (n_ct * n_bt,) int32 bitmap: 1 iff batch-tile i contains a label that
    # falls inside class-tile j.  Scalar-prefetched to SMEM so the kernel can
    # skip the margin epilogue on tiles with no label column.
    row_tile = jnp.arange(B, dtype=jnp.int32) // tm
    flat_idx = (label.astype(jnp.int32) // tn) * n_bt + row_tile
    bitmap = jnp.zeros((n_ct * n_bt,), jnp.int32).at[flat_idx].set(1)

    batch_sem = "arbitrary" if n_bt == 1 else "parallel"

    out = pl.pallas_call(
        _arcface_kernel,
        out_shape=jax.ShapeDtypeStruct((b_pad, c_pad), out_dtype),
        grid_spec=pltpu.PrefetchScalarGridSpec(
            num_scalar_prefetch=1,
            # Class tiles outer, batch tiles inner: the weight block index is
            # constant across the inner axis, so each W slab is streamed from
            # HBM only once.
            grid=(n_ct, n_bt),
            in_specs=[
                pl.BlockSpec((tm, E), lambda j, i, bm: (i, 0)),   # embeddings
                pl.BlockSpec((E, tn), lambda j, i, bm: (0, j)),   # weight
                pl.BlockSpec((1, tn), lambda j, i, bm: (0, j)),   # col scales
                pl.BlockSpec((tm, 1), lambda j, i, bm: (i, 0)),   # labels
            ],
            out_specs=pl.BlockSpec((tm, tn), lambda j, i, bm: (i, j)),
        ),
        compiler_params=pltpu.CompilerParams(
            dimension_semantics=("parallel", batch_sem),
            vmem_limit_bytes=VMEM_LIMIT_BYTES),
    )(bitmap, emb_q, w_q, col_scale, lab2d)

    if b_pad != B or c_pad != classnum:
        out = out[:B, :classnum]
    return out


# ------------------------------ pure-JAX mirror ------------------------------
def _arcface_reference(embeddings, label, weight, matmul_weight=None):
    """Mirror of the PyTorch forward (arccos/cos).  `matmul_weight`, if given,
    is the (rounded / dequantized) matmul operand while the column norms still
    come from the full-precision `weight` — exactly what the quantized kernel
    paths compute."""
    w_mm = weight if matmul_weight is None else matmul_weight
    inv = 1.0 / jnp.linalg.norm(weight, axis=0, keepdims=True)
    cosine = jnp.dot(embeddings, w_mm,
                     precision=jax.lax.Precision.HIGHEST) * inv
    cosine = jnp.clip(cosine, -1.0 + EPS, 1.0 - EPS)
    m_hot = jax.nn.one_hot(label, cosine.shape[1], dtype=cosine.dtype) * M
    theta = jnp.arccos(cosine)
    theta_m = jnp.clip(theta + m_hot, EPS, math.pi - EPS)
    return jnp.cos(theta_m) * S


if __name__ == "__main__":
    key = jax.random.PRNGKey(0)
    k_w, k_e, k_l, k_n = jax.random.split(key, 4)

    B, E, C = 8, 32, 256   # small test shapes (reference: E=512, C=51332)

    # Parameter init mimicking uniform_(-1,1).renorm_(2,1,1e-5).mul_(1e5)
    # (net effect: every column L2-normalized).
    w = jax.random.uniform(k_w, (E, C), minval=-1.0, maxval=1.0,
                           dtype=jnp.float32)
    w = w / jnp.linalg.norm(w, axis=0, keepdims=True)

    embeddings = jax.random.normal(k_e, (B, E), dtype=jnp.float32)
    embeddings = embeddings / jnp.linalg.norm(embeddings, axis=1, keepdims=True)
    norms = jnp.abs(jax.random.normal(k_n, (B, 1), dtype=jnp.float32)) + 1.0
    label = jax.random.randint(k_l, (B,), 0, C, dtype=jnp.int32)

    ref_f32 = _arcface_reference(embeddings, label, w)

    # --- f32 weight path ------------------------------------------------
    w_f, s_f = prepare_arcface_weight(w, jnp.float32)
    out_f32 = jax.block_until_ready(
        arcface_forward(embeddings, norms, label, w_f, s_f, C))
    # Tolerance leaves headroom for MXU f32-matmul pass decomposition.
    np.testing.assert_allclose(np.asarray(out_f32), np.asarray(ref_f32),
                               rtol=5e-3, atol=5e-2)

    # --- bf16 weight-streaming path (default) ----------------------------
    w_b, s_b = prepare_arcface_weight(w, jnp.bfloat16)
    w_rt = w.astype(jnp.bfloat16).astype(jnp.float32)
    emb_rt = embeddings.astype(jnp.bfloat16).astype(jnp.float32)
    ref_bf16 = _arcface_reference(emb_rt, label, w, matmul_weight=w_rt)

    out_bf16 = jax.block_until_ready(
        arcface_forward(embeddings, norms, label, w_b, s_b, C))
    np.testing.assert_allclose(np.asarray(out_bf16), np.asarray(ref_bf16),
                               rtol=1e-3, atol=5e-3)

    # Same path with multiple class tiles (exercises the label bitmap gating
    # and the iota-based column indexing across tiles).
    w_b2, s_b2 = prepare_arcface_weight(w, jnp.bfloat16, class_tile=128)
    out_bf16_t = jax.block_until_ready(
        arcface_forward(embeddings, norms, label, w_b2, s_b2, C,
                        class_tile=128))
    np.testing.assert_allclose(np.asarray(out_bf16_t), np.asarray(ref_bf16),
                               rtol=1e-3, atol=5e-3)

    # --- int8 weight-streaming path --------------------------------------
    w_i, s_i = prepare_arcface_weight(w, jnp.int8)
    maxabs = jnp.max(jnp.abs(w), axis=0, keepdims=True)
    scale = jnp.where(maxabs > 0, maxabs / 127.0, 1.0)
    w_deq = jnp.round(w / scale).astype(jnp.int8).astype(jnp.float32) * scale
    ref_i8 = _arcface_reference(emb_rt, label, w, matmul_weight=w_deq)

    out_i8 = jax.block_until_ready(
        arcface_forward(embeddings, norms, label, w_i, s_i, C))
    np.testing.assert_allclose(np.asarray(out_i8), np.asarray(ref_i8),
                               rtol=1e-3, atol=5e-3)

    print("KERNEL_OK")
</pallas_src>

<mosaic_0001>
module attributes {stable_mosaic.version = 11 : i64} {
  func.func @_arcface_kernel(%arg0: i32, %arg1: i32, %arg2: memref<1xi32, #tpu.memory_space<smem>>, %arg3: memref<8x32xf32, #tpu.memory_space<vmem>>, %arg4: memref<32x256xf32, #tpu.memory_space<vmem>>, %arg5: memref<1x256xf32, #tpu.memory_space<vmem>>, %arg6: memref<8x1xi32, #tpu.memory_space<vmem>>, %arg7: memref<8x256xf32, #tpu.memory_space<vmem>>) attributes {dimension_semantics = [#tpu.dimension_semantics<parallel>, #tpu.dimension_semantics<arbitrary>], iteration_bounds = array<i64: 1, 1>, scalar_prefetch = 1 : i64, scratch_operands = 0 : i64, tpu.core_type = #tpu.core_type<tc>, window_params = [{transform_indices = @transform_0, window_bounds = array<i64: 8, 32>}, {transform_indices = @transform_1, window_bounds = array<i64: 32, 256>}, {transform_indices = @transform_2, window_bounds = array<i64: 1, 256>}, {transform_indices = @transform_3, window_bounds = array<i64: 8, 1>}, {transform_indices = @transform_4, window_bounds = array<i64: 8, 256>}]} {
    %c0 = arith.constant 0 : index
    %c0_0 = arith.constant 0 : index
    %0 = vector.load %arg4[%c0, %c0_0] : memref<32x256xf32, #tpu.memory_space<vmem>>, vector<32x256xf32>
    %c0_1 = arith.constant 0 : index
    %c0_2 = arith.constant 0 : index
    %1 = vector.load %arg3[%c0_1, %c0_2] : memref<8x32xf32, #tpu.memory_space<vmem>>, vector<8x32xf32>
    %cst = arith.constant dense<0.000000e+00> : vector<8x256xf32>
    %2 = tpu.matmul %1, %0, %cst {dimension_numbers = #tpu.dot_dimension_numbers<[1], [0], [0], [1], [0, 0, 1, 1], [], []>, precision = #tpu.contract_precision<fp32>} : vector<8x32xf32>, vector<32x256xf32>, vector<8x256xf32> -> vector<8x256xf32>
    %c0_3 = arith.constant 0 : index
    %c0_4 = arith.constant 0 : index
    %3 = vector.load %arg5[%c0_3, %c0_4] : memref<1x256xf32, #tpu.memory_space<vmem>>, vector<1x256xf32>
    %4 = vector.broadcast %3 : vector<1x256xf32> to vector<8x256xf32>
    %5 = arith.mulf %2, %4 : vector<8x256xf32>
    %cst_5 = arith.constant -0.999899983 : f32
    %cst_6 = arith.constant 0.999899983 : f32
    %6 = vector.broadcast %cst_5 : f32 to vector<8x256xf32>
    %7 = arith.maximumf %6, %5 : vector<8x256xf32>
    %8 = vector.broadcast %cst_6 : f32 to vector<8x256xf32>
    %9 = arith.minimumf %8, %7 : vector<8x256xf32>
    %cst_7 = arith.constant 6.400000e+01 : f32
    %10 = vector.broadcast %cst_7 : f32 to vector<8x256xf32>
    %11 = arith.mulf %9, %10 : vector<8x256xf32>
    %c0_8 = arith.constant 0 : index
    %c0_9 = arith.constant 0 : index
    %12 = vector.load %arg7[%c0_8, %c0_9] : memref<8x256xf32, #tpu.memory_space<vmem>>, vector<8x256xf32>
    tpu.vector_store %arg7[%c0_8, %c0_9], %11 {strides = array<i32>} : memref<8x256xf32, #tpu.memory_space<vmem>>, vector<8x256xf32>,
    %c1_i32 = arith.constant 1 : i32
    %13 = arith.muli %arg0, %c1_i32 : i32
    %14 = arith.addi %13, %arg1 : i32
    %15 = arith.index_cast %14 : i32 to index
    %16 = memref.load %arg2[%15] : memref<1xi32, #tpu.memory_space<smem>>
    %c0_i32 = arith.constant 0 : i32
    %17 = arith.cmpi ne, %16, %c0_i32 : i32
    %18 = arith.extui %17 : i1 to i32
    %c0_i32_10 = arith.constant 0 : i32
    %19 = arith.cmpi ne, %18, %c0_i32_10 : i32
    scf.if %19 {
      %20 = arith.mulf %9, %9 : vector<8x256xf32>
      %cst_11 = arith.constant 1.000000e+00 : f32
      %21 = vector.broadcast %cst_11 : f32 to vector<8x256xf32>
      %22 = arith.subf %21, %20 : vector<8x256xf32>
      %cst_12 = arith.constant 0.000000e+00 : f32
      %23 = vector.broadcast %cst_12 : f32 to vector<8x256xf32>
      %24 = arith.maximumf %22, %23 : vector<8x256xf32>
      %25 = math.sqrt %24 : vector<8x256xf32>
      %cst_13 = arith.constant 0.87758255 : f32
      %26 = vector.broadcast %cst_13 : f32 to vector<8x256xf32>
      %27 = arith.mulf %9, %26 : vector<8x256xf32>
      %cst_14 = arith.constant 0.47942555 : f32
      %28 = vector.broadcast %cst_14 : f32 to vector<8x256xf32>
      %29 = arith.mulf %25, %28 : vector<8x256xf32>
      %30 = arith.subf %27, %29 : vector<8x256xf32>
      %cst_15 = arith.constant -0.877534628 : f32
      %31 = vector.broadcast %cst_15 : f32 to vector<8x256xf32>
      %32 = arith.cmpf olt, %9, %31 : vector<8x256xf32>
      %cst_16 = arith.constant -1.000000e+00 : f32
      %33 = vector.broadcast %cst_16 : f32 to vector<8x256xf32>
      %34 = arith.select %32, %33, %30 : vector<8x256xi1>, vector<8x256xf32>
      %c256_i32 = arith.constant 256 : i32
      %35 = arith.muli %arg0, %c256_i32 : i32
      %36 = tpu.iota {dimensions = array<i32: 1>} : vector<1x256xi32>
      %37 = vector.broadcast %35 : i32 to vector<1x256xi32>
      %38 = arith.addi %37, %36 : vector<1x256xi32>
      %c0_17 = arith.constant 0 : index
      %c0_18 = arith.constant 0 : index
      %39 = vector.load %arg6[%c0_17, %c0_18] : memref<8x1xi32, #tpu.memory_space<vmem>>, vector<8x1xi32>
      %40 = vector.broadcast %39 : vector<8x1xi32> to vector<8x256xi32>
      %41 = vector.broadcast %38 : vector<1x256xi32> to vector<8x256xi32>
      %42 = arith.cmpi eq, %40, %41 : vector<8x256xi32>
      %43 = arith.select %42, %34, %9 : vector<8x256xi1>, vector<8x256xf32>
      %cst_19 = arith.constant 6.400000e+01 : f32
      %44 = vector.broadcast %cst_19 : f32 to vector<8x256xf32>
      %45 = arith.mulf %43, %44 : vector<8x256xf32>
      %c0_20 = arith.constant 0 : index
      %c0_21 = arith.constant 0 : index
      %46 = vector.load %arg7[%c0_20, %c0_21] : memref<8x256xf32, #tpu.memory_space<vmem>>, vector<8x256xf32>
      tpu.vector_store %arg7[%c0_20, %c0_21], %45 {strides = array<i32>} : memref<8x256xf32, #tpu.memory_space<vmem>>, vector<8x256xf32>,
    } else {
    }
    return
  }
  func.func @transform_0(%arg0: i32, %arg1: i32, %arg2: memref<1xi32, #tpu.memory_space<smem>>) -> (i32, i32) {
    %c0_i32 = arith.constant 0 : i32
    %c0_i32_0 = arith.constant 0 : i32
    return %arg1, %c0_i32 : i32, i32
  }
  func.func @transform_1(%arg0: i32, %arg1: i32, %arg2: memref<1xi32, #tpu.memory_space<smem>>) -> (i32, i32) {
    %c0_i32 = arith.constant 0 : i32
    %c0_i32_0 = arith.constant 0 : i32
    return %c0_i32, %arg0 : i32, i32
  }
  func.func @transform_2(%arg0: i32, %arg1: i32, %arg2: memref<1xi32, #tpu.memory_space<smem>>) -> (i32, i32) {
    %c0_i32 = arith.constant 0 : i32
    %c0_i32_0 = arith.constant 0 : i32
    return %c0_i32, %arg0 : i32, i32
  }
  func.func @transform_3(%arg0: i32, %arg1: i32, %arg2: memref<1xi32, #tpu.memory_space<smem>>) -> (i32, i32) {
    %c0_i32 = arith.constant 0 : i32
    %c0_i32_0 = arith.constant 0 : i32
    return %arg1, %c0_i32 : i32, i32
  }
  func.func @transform_4(%arg0: i32, %arg1: i32, %arg2: memref<1xi32, #tpu.memory_space<smem>>) -> (i32, i32) {
    %c0_i32 = arith.constant 0 : i32
    return %arg1, %arg0 : i32, i32
  }
}

</mosaic_0001>

<bundles_post_ra>
// kernel: tpu_custom_call.1
= control target key start
LH: loop header
LB: loop body
LE: loop exit
PB: predicated region body
PF: predicated region fallthrough
CT: control target
= control target key end

     0   :  { %11 = vsyncpa [#allocation5], 0  ;;  %s892_s0 = inlined_call_operand.<no memory space> [shape: s32[1], index: 0, kind: input, shape index: {}]   ;;  %s893_s1 = inlined_call_operand.vmem [shape: f32[8,32], index: 1, kind: input, shape index: {}]   ;;  %s894_s2 = inlined_call_operand.hbm [shape: f32[32,256], index: 2, kind: input, shape index: {}]   ;;  %s895_s3 = inlined_call_operand.vmem [shape: f32[1,256], index: 3, kind: input, shape index: {}]   ;;  %s896_s4 = inlined_call_operand.vmem [shape: s32[8,1], index: 4, kind: input, shape index: {}]   ;;  %s897_s5 = inlined_call_operand.hbm [shape: f32[8,256], index: 5, kind: output, shape index: {}]  }
   0x1   :  { %12 = vsyncpa [#allocation6], 0  ;;  %s740_s18 = smov [#allocation4]  }
   0x2   :  { %s20_s19 = sshll.u32 %s740_s18, 4  ;;  %s21_s19 = int_to_ptr.vmem [resolvable:$true] %s20_s19 }
   0x3   :  { %s704_s20 = scalar_lea.vmem %s21_s19, 1024  ;;  %p709_p1 = scmp.lt.s32.totalorder %s21_s19, %s21_s19 }
   0x4   :  { %p705_p0 = scmp.ne.s32.totalorder %s21_s19, %s704_s20  ;;  %p710_p2 = scmp.lt.s32.totalorder %s704_s20, %s704_s20 }
   0x6   :  { %p711_p3 = por %p710_p2, %p709_p1 }
   0x8   :  { %p712_p4 = pnand %p711_p3, %p705_p0 }
   0xa   :  { %715 = shalt.err (!%p712_p4)
}
   0xb   :  { %s741_s21 = smov 256   ;;  %s742_s22 = smov 16  }
   0xc   :  { %26 = dma.hbm_to_vmem [thread:$0]  %s894_s2, 1024, %s21_s19, [#allocation5], %s741_s21, %s741_s21, %s742_s22  }
   0xd   :  { %736 = dma.done.wait [#allocation5], 1024  }
   0xe   :  { %737 = vsyncadd [#allocation5], 4294966272  ;;  %v743_v0 = vmov 0.0   ;;  %v41_v1 = vld [vmem:[#allocation4 + $0x38] sm:$0xff]  ;;  %v40_v2 = vld [vmem:[#allocation4 + $0x30] sm:$0xff]  ;;  %vm43_vm0 = vcmask 261120   ;;  %v592_v59 = vlaneseq }
   0xf   :  { %119 = vmatprep.mubr.f32.mxu0 %v743_v0  ;;  %235 = vmatprep.mubr.f32.mxu1 %v743_v0  ;;  %v39_v3 = vld [vmem:[#allocation4 + $0x28] sm:$0xff]  ;;  %v781_v4 = vand.u32 4294901760, %v41_v1  ;;  %v783_v5 = vand.u32 4294901760, %v40_v2  ;;  %v38_v7 = vld [vmem:[#allocation4 + $0x20] sm:$0xff]  ;;  %v37_v8 = vld [vmem:[#allocation4 + $0x18] sm:$0xff]  ;;  %p684_p5 = scmp.eq.s32.totalorder %s892_s0, 0 }
  0x10   :  { %v785_v6 = vand.u32 4294901760, %v39_v3  ;;  %v36_v9 = vld [vmem:[#allocation4 + $0x10] sm:$0xff]  ;;  %v787_v10 = vand.u32 4294901760, %v38_v7  ;;  %v789_v11 = vand.u32 4294901760, %v37_v8  ;;  %v35_v13 = vld [vmem:[#allocation4 + $0x8] sm:$0xff]  ;;  %v34_v14 = vld [vmem:[#allocation4] sm:$0xff] }
  0x11   :  { %v791_v12 = vand.u32 4294901760, %v36_v9  ;;  %v42_v15 = vld [vmem:[%s893_s1] sm:$0xff]  ;;  %72 = vmatprep.subr.mxu0 %v781_v4  ;;  %v797_v16 = vand.u32 4294901760, %v35_v13  ;;  %v800_v17 = vsub.f32 %v41_v1, %v781_v4  ;;  %v802_v18 = vand.u32 4294901760, %v34_v14 }
  0x12   :  { %v805_v19 = vsub.f32 %v40_v2, %v783_v5  ;;  %74 = vmatpush1.msra.mxu0 %v783_v5  ;;  %v809_v20 = vsub.f32 %v39_v3, %v785_v6  ;;  %v45_v21 = vsel %vm43_vm0, %v42_v15, 0  ;;  %v813_v22 = vsub.f32 %v38_v7, %v787_v10 }
  0x13   :  { %v816_v23 = vsub.f32 %v37_v8, %v789_v11  ;;  %76 = vmatprep.subr.mxu0 %v785_v6  ;;  %v157_v24 = vand.u32 4294901760, %v800_v17  ;;  %v821_v26 = vand.u32 4294901760, %v45_v21  ;;  %v824_v27 = vsub.f32 %v36_v9, %v791_v12  ;;  %v590_v9 = vld [vmem:[%s895_s3] sm:$0x3] }
  0x14   :  { %v163_v25 = vand.u32 4294901760, %v805_v19  ;;  %78 = vmatpush1.msra.mxu0 %v787_v10  ;;  %v169_v28 = vand.u32 4294901760, %v809_v20  ;;  %v175_v29 = vand.u32 4294901760, %v813_v22  ;;  %v831_v31 = vsub.f32 %v35_v13, %v797_v16 }
  0x15   :  { %v181_v30 = vand.u32 4294901760, %v816_v23  ;;  %80 = vmatprep.subr.mxu0 %v789_v11  ;;  %v158_v32 = vsub.f32 %v800_v17, %v157_v24  ;;  %v121_v34 = vsub.f32 %v45_v21, %v821_v26  ;;  %v187_v35 = vand.u32 4294901760, %v824_v27 }
  0x16   :  { %v164_v33 = vsub.f32 %v805_v19, %v163_v25  ;;  %82 = vmatpush1.msra.mxu0 %v791_v12  ;;  %v170_v36 = vsub.f32 %v809_v20, %v169_v28  ;;  %v176_v37 = vsub.f32 %v813_v22, %v175_v29  ;;  %v193_v39 = vand.u32 4294901760, %v831_v31 }
  0x17   :  { %v182_v38 = vsub.f32 %v816_v23, %v181_v30  ;;  %84 = vmatprep.subr.mxu0 %v797_v16  ;;  %v159_v40 = vand.u32 4294901760, %v158_v32  ;;  %v122_v42 = vand.u32 4294901760, %v121_v34  ;;  %v188_v43 = vsub.f32 %v824_v27, %v187_v35 }
  0x18   :  { %v165_v41 = vand.u32 4294901760, %v164_v33  ;;  %86 = vmatpush1.msra.mxu0 %v802_v18  ;;  %v171_v44 = vand.u32 4294901760, %v170_v36  ;;  %v177_v45 = vand.u32 4294901760, %v176_v37  ;;  %v194_v46 = vsub.f32 %v831_v31, %v193_v39 }
  0x19   :  { %160 = vmatprep.subr.mxu1 %v159_v40  ;;  %269 = vmatprep.subr.mxu0 %v800_v17  ;;  %v123_v47 = vsub.f32 %v121_v34, %v122_v42  ;;  %v183_v48 = vand.u32 4294901760, %v182_v38  ;;  %v198_v49 = vsub.f32 %v34_v14, %v802_v18  ;;  %v189_v50 = vand.u32 4294901760, %v188_v43 }
  0x1a   :  { %166 = vmatpush1.msra.mxu1 %v165_v41  ;;  %v195_v52 = vand.u32 4294901760, %v194_v46 }
  0x1b   :  { %172 = vmatprep.subr.mxu1 %v171_v44  ;;  %v124_v51 = vand.u32 4294901760, %v123_v47  ;;  %v199_v53 = vand.u32 4294901760, %v198_v49 }
  0x1c   :  { %178 = vmatpush1.msra.mxu1 %v177_v45 }
  0x1d   :  { %125 = vmatmul.mubr.f32.vlgmr.msra.gmra.mxu0 %v124_v51  ;;  %184 = vmatprep.subr.mxu1 %v183_v48  ;;  %v200_v54 = vsub.f32 %v198_v49, %v199_v53 }
  0x1e   :  { %272 = vmatpush1.msra.mxu0 %v805_v19  ;;  %190 = vmatpush1.msra.mxu1 %v189_v50 }
  0x1f   :  { %275 = vmatprep.subr.mxu0 %v809_v20  ;;  %196 = vmatprep.subr.mxu1 %v195_v52  ;;  %v201_v55 = vand.u32 4294901760, %v200_v54 }
  0x20   :  { %278 = vmatpush1.msra.mxu0 %v813_v22  ;;  %323 = vmatprep.mubr.f32.mxu0 %v743_v0 }
  0x21   :  { %281 = vmatprep.subr.mxu0 %v816_v23  ;;  %202 = vmatpush1.msra.mxu1 %v201_v55 }
  0x22   :  { %284 = vmatpush1.msra.mxu0 %v824_v27  ;;  %237 = vmatmul.mubr.f32.vlgmr.msra.gmra.mxu1 %v821_v26 }
  0x23   :  { %287 = vmatprep.subr.mxu0 %v831_v31  ;;  %357 = vmatprep.subr.mxu1 %v781_v4 }
  0x24   :  { %290 = vmatpush1.msra.mxu0 %v198_v49  ;;  %359 = vmatpush1.msra.mxu1 %v783_v5 }
  0x25   :  { %326 = vmatmul.mubr.f32.vlgmr.msra.gmra.mxu0 %v121_v34  ;;  %361 = vmatprep.subr.mxu1 %v785_v6 }
  0x26   :  { %441 = vmatprep.subr.mxu0 %v157_v24  ;;  %363 = vmatpush1.msra.mxu1 %v787_v10 }
  0x27   :  { %445 = vmatpush1.msra.mxu0 %v163_v25  ;;  %365 = vmatprep.subr.mxu1 %v789_v11 }
  0x28   :  { %449 = vmatprep.subr.mxu0 %v169_v28  ;;  %367 = vmatpush1.msra.mxu1 %v791_v12 }
  0x29   :  { %453 = vmatpush1.msra.mxu0 %v175_v29  ;;  %369 = vmatprep.subr.mxu1 %v797_v16 }
  0x2a   :  { %457 = vmatprep.subr.mxu0 %v181_v30  ;;  %371 = vmatpush1.msra.mxu1 %v802_v18 }
  0x2b   :  { %404 = vmatprep.mubr.f32.mxu1 %v743_v0  ;;  %461 = vmatpush1.msra.mxu0 %v187_v35 }
  0x2c   :  { %408 = vmatmul.mubr.f32.vlgmr.msra.gmra.mxu1 %v122_v42  ;;  %465 = vmatprep.subr.mxu0 %v193_v39 }
  0x2d   :  { %535 = vmatprep.subr.mxu1 %v781_v4  ;;  %469 = vmatpush1.msra.mxu0 %v199_v53 }
  0x2e   :  { %502 = vmatprep.mubr.f32.mxu0 %v743_v0  ;;  %537 = vmatpush1.msra.mxu1 %v783_v5 }
  0x2f   :  { %504 = vmatmul.mubr.f32.vlgmr.msra.gmra.mxu0 %v821_v26  ;;  %539 = vmatprep.subr.mxu1 %v785_v6 }
  0x30   :  { %541 = vmatpush1.msra.mxu1 %v787_v10  ;;  %582 = vmatprep.mubr.f32.mxu1 %v743_v0  ;;  %v593_v0 = vshrl.u32 %v592_v59, 7 }
  0x31   :  { %543 = vmatprep.subr.mxu1 %v789_v11 }
  0x32   :  { %545 = vmatpush1.msra.mxu1 %v791_v12  ;;  %v594_v8 = vsub.s32 0, %v593_v0  ;;  %v598_v11 = vsub.s32 1, %v593_v0 }
  0x33   :  { %547 = vmatprep.subr.mxu1 %v797_v16 }
  0x34   :  { %549 = vmatpush1.msra.mxu1 %v802_v18  ;;  %v595_v14 = vrot.slane %v590_v9, %v594_v8  ;;  %v599_v18 = vrot.slane %v590_v9, %v598_v11 }
  0x35   :  { %584 = vmatmul.mubr.f32.vlgmr.msra.gmra.mxu1 %v821_v26 }
  0xdd   :  { %v126_v56 = vpop.f32.mrf.mxu0 }
  0xdf   :  { %v128_v57 = vpop.f32.mrf.mxu0 }
  0xe2   :  { %v238_v58 = vpop.f32.mrf.mxu1 }
  0xe3   :  { %v239_v62 = vadd.f32 %v238_v58, %v126_v56 }
  0xe4   :  { %v240_v60 = vpop.f32.mrf.mxu1 }
  0xe5   :  { %v327_v61 = vpop.f32.mrf.mxu0  ;;  %v241_v63 = vadd.f32 %v240_v60, %v128_v57 }
  0xe6   :  { %v328_v3 = vadd.f32 %v327_v61, %v239_v62 }
  0xe7   :  { %v329_v2 = vpop.f32.mrf.mxu0 }
  0xe8   :  { %v330_v6 = vadd.f32 %v329_v2, %v241_v63 }
  0xec   :  { %v409_v1 = vpop.f32.mrf.mxu1 }
  0xed   :  { %v410_v7 = vadd.f32 %v409_v1, %v328_v3 }
  0xee   :  { %v411_v4 = vpop.f32.mrf.mxu1 }
  0xef   :  { %v505_v5 = vpop.f32.mrf.mxu0  ;;  %v412_v10 = vadd.f32 %v411_v4, %v330_v6 }
  0xf0   :  { %v506_v13 = vadd.f32 %v505_v5, %v410_v7 }
  0xf1   :  { %v507_v12 = vpop.f32.mrf.mxu0 }
  0xf2   :  { %v508_v16 = vadd.f32 %v507_v12, %v412_v10 }
  0xf5   :  { %v585_v15 = vpop.f32.mrf.mxu1 }
  0xf6   :  { %v586_v17 = vadd.f32 %v585_v15, %v506_v13 }
  0xf7   :  { %v587_v19 = vpop.f32.mrf.mxu1 }
  0xf8   :  { %v602_v20 = vmul.f32 %v595_v14, %v586_v17  ;;  %v588_v21 = vadd.f32 %v587_v19, %v508_v16 }
  0xfa   :  { %v682_v22 = vclamps-f32 %v602_v20, 0.9999  ;;  %v603_v23 = vmul.f32 %v599_v18, %v588_v21 }
  0xfc   :  { %v608_v24 = vmul.f32 64.0, %v682_v22  ;;  %v683_v25 = vclamps-f32 %v603_v23, 0.9999  ;;  %617 = sbr.rel (%p684_p5) target bundleno = 388 (0x184), region = 25 }
  0xfe   :  { %610 = vst [vmem:[#allocation7] sm:$0xff] %v608_v24  ;;  %v609_v26 = vmul.f32 64.0, %v683_v25 }
 0x100   :  { %611 = vst [vmem:[#allocation7 + $0x8] sm:$0xff] %v609_v26 }
 0x101   :  { %v655_v27 = vld [vmem:[%s896_s4] sm:$0xff]  ;;  %v744_v28 = vmov 0   ;;  %v618_v29 = vmul.f32 %v682_v22, %v682_v22  ;;  %v619_v30 = vmul.f32 %v683_v25, %v683_v25  ;;  %v638_v45 = vmul.f32 0.87758255, %v682_v22 }
 0x102   :  { %691 = vset.pattern.permute.xlu0 %v744_v28  ;;  %v639_v46 = vmul.f32 0.87758255, %v683_v25  ;;  %v650_v49 = vand.u32 127, %v592_v59  ;;  %vm644_vm5 = vcmp.lt.f32.partialorder %v682_v22, -0.8775346 }
 0x103   :  { %657 = vperm.xlu0 %691, %v655_v27   ;;  %v620_v31 = vsub.f32 1.0, %v618_v29  ;;  %v621_v32 = vsub.f32 1.0, %v619_v30  ;;  %vm645_vm6 = vcmp.lt.f32.partialorder %v683_v25, -0.8775346 }
 0x104   :  { %v651_v52 = vadd.s32 128, %v650_v49 }
 0x105   :  { %v622_v33 = vmax.f32 %v620_v31, 0.0  ;;  %v623_v34 = vmax.f32 %v621_v32, 0.0 }
 0x107   :  { %692 = vrsqrt.f32 %v622_v33  ;;  %vm626_vm1 = vcmp.eq.f32.partialorder %v622_v33, inf  ;;  %vm633_vm2 = vcmp.eq.f32.partialorder %v623_v34, inf  ;;  %v629_v39 = vand.u32 2147483648, %v622_v33 }
 0x108   :  { %694 = vrsqrt.f32 %v623_v34  ;;  %v636_v40 = vand.u32 2147483648, %v623_v34  ;;  %vm628_vm3 = vcmp.eq.f32.partialorder %v622_v33, 0.0  ;;  %vm635_vm4 = vcmp.eq.f32.partialorder %v623_v34, 0.0 }
 0x114   :  { %v693_v35 = vpop.eup %692 }
 0x115   :  { %v695_v36 = vpop.eup %694  ;;  %v625_v37 = vmul.f32 %v693_v35, %v622_v33 }
 0x116   :  { %v632_v38 = vmul.f32 %v695_v36, %v623_v34 }
 0x117   :  { %v627_v41 = vsel %vm626_vm1, %v622_v33, %v625_v37 }
 0x118   :  { %v634_v42 = vsel %vm633_vm2, %v623_v34, %v632_v38  ;;  %v630_v43 = vsel %vm628_vm3, %v629_v39, %v627_v41 }
 0x119   :  { %v637_v44 = vsel %vm635_vm4, %v636_v40, %v634_v42  ;;  %v640_v47 = vmul.f32 0.47942555, %v630_v43 }
 0x11a   :  { %v641_v48 = vmul.f32 0.47942555, %v637_v44 }
 0x11b   :  { %v642_v50 = vsub.f32 %v638_v45, %v640_v47 }
 0x11c   :  { %v643_v51 = vsub.f32 %v639_v46, %v641_v48 }
 0x11d   :  { %v646_v53 = vsel %vm644_vm5, -1.0, %v642_v50 }
 0x11e   :  { %v647_v54 = vsel %vm645_vm6, -1.0, %v643_v51 }
 0x17e   :  { %v658_v55 = vpop.permute.xlu0 %657 }
 0x17f   :  { %vm659_vm7 = vcmp.eq.s32.totalorder %v658_v55, %v650_v49  ;;  %vm660_vm8 = vcmp.eq.s32.totalorder %v658_v55, %v651_v52 }
 0x180   :  { %v661_v56 = vsel %vm659_vm7, %v646_v53, %v682_v22  ;;  %v662_v57 = vsel %vm660_vm8, %v647_v54, %v683_v25 }
 0x181   :  { %v663_v58 = vmul.f32 64.0, %v661_v56  ;;  %v664_v60 = vmul.f32 64.0, %v662_v57 }
 0x183   :  { %665 = vst [vmem:[#allocation7] sm:$0xff] %v663_v58  ;;  %666 = vst [vmem:[#allocation7 + $0x8] sm:$0xff] %v664_v60 }
 0x184 PF:  { %s745_s0 = smov [#allocation7]  }
 0x185   :  { %s673_s4 = sshll.u32 %s745_s0, 4  ;;  %s674_s4 = int_to_ptr.vmem [resolvable:$true] %s673_s4 }
 0x186   :  { %s716_s30 = scalar_lea.vmem %s674_s4, 256  ;;  %p721_p7 = scmp.lt.s32.totalorder %s674_s4, %s674_s4 }
 0x187   :  { %p717_p6 = scmp.ne.s32.totalorder %s674_s4, %s716_s30  ;;  %p722_p8 = scmp.lt.s32.totalorder %s716_s30, %s716_s30 }
 0x189   :  { %p723_p9 = por %p722_p8, %p721_p7 }
 0x18b   :  { %p724_p10 = pnand %p723_p9, %p717_p6 }
 0x18d   :  { %727 = shalt.err (!%p724_p10)
}
 0x18e   :  { %676 = dma.vmem_to_hbm [thread:$0]  %s674_s4, 256, %s897_s5, [#allocation6]  }
 0x18f   :  { %738 = dma.done.wait [#allocation6], 256  }
 0x190   :  { %739 = vsyncadd [#allocation6], 4294967040 }
 0x191   :  { %680 = vsyncpa [#allocation5], 1 }
 0x192   :  { %681 = vsyncpa [#allocation6], 1 }

</bundles_post_ra>
